<compile_context>
chip_gen: v6e
topology: v6e:2x2x1
jax: 0.10.0
libtpu: 0.0.40
codegen_flags: <defaults>
</compile_context>

<pallas_src>
import jax
import jax.numpy as jnp
import numpy as np
from jax.experimental import pallas as pl
from jax.experimental.pallas import tpu as pltpu


def _round_up(x, m):
    return ((x + m - 1) // m) * m


# ----------------------------------------------------------------------------
# Fused Pallas kernel: all SCNN layers + linear head + nanmean
# ----------------------------------------------------------------------------
def make_fused_scnn_kernel(n_layers, kd, ku, k_total):
    """Kernel signature:
       (x_t, L_down_T, L_up_T, w_stacked, lin_w_col, lin_b, out)
       x_t:       (C_pad, N)          transposed features (channels on sublanes)
       L_*_T:     (N, N)              host-pre-transposed Laplacians
       w_stacked: (n_layers*K, C_pad, C_pad)   W^T per (layer, term)
       lin_w_col: (C_pad, 1)          head weight as a column
       lin_b:     (1,)  in SMEM
       out:       (1, 1)
    """

    def kernel(x_ref, ldt_ref, lut_ref, w_ref, lin_w_ref, lin_b_ref, out_ref):
        cdt = x_ref.dtype                       # compute dtype (f32 or bf16)
        x = x_ref[...]                          # (C_pad, N)
        ldt = ldt_ref[...]                      # (N, N) = L_down^T
        lut = lut_ref[...]                      # (N, N) = L_up^T

        for layer in range(n_layers):
            base = layer * k_total
            # Identity term: acc = W_0^T @ x^T
            acc = jnp.dot(w_ref[base], x, preferred_element_type=jnp.float32)
            # Lower-Laplacian power chain, accumulated term-by-term
            # (no concat, single live accumulator).
            t = x
            for k in range(kd):
                t = jnp.dot(t, ldt, preferred_element_type=jnp.float32).astype(cdt)
                acc = acc + jnp.dot(w_ref[base + 1 + k], t,
                                    preferred_element_type=jnp.float32)
            # Upper-Laplacian power chain
            t = x
            for k in range(ku):
                t = jnp.dot(t, lut, preferred_element_type=jnp.float32).astype(cdt)
                acc = acc + jnp.dot(w_ref[base + 1 + kd + k], t,
                                    preferred_element_type=jnp.float32)
            x = acc.astype(cdt)                 # (C_pad, N) for the next layer

        # Head: linear(C_out -> 1) as a sublane reduce (avoids a 1-row matmul),
        # then nanmean over simplices (lane reduce), then NaN -> 0.
        xf = x.astype(jnp.float32)
        x1 = jnp.sum(xf * lin_w_ref[...], axis=0, keepdims=True) + lin_b_ref[0]  # (1, N)
        isnan = jnp.isnan(x1)
        cnt = jnp.sum(jnp.where(isnan, 0.0, 1.0), axis=1, keepdims=True)   # (1, 1)
        s = jnp.sum(jnp.where(isnan, 0.0, x1), axis=1, keepdims=True)      # (1, 1)
        out_ref[...] = jnp.where(cnt > 0.0, s / cnt, 0.0)

    return kernel


# ----------------------------------------------------------------------------
# One-time parameter preparation (hoisted out of the per-forward path)
# ----------------------------------------------------------------------------
def prepare_params(params, conv_order_down, conv_order_up,
                   compute_dtype=jnp.float32):
    """Torch-layout params -> kernel layout (transposed, sublane-padded, stacked)."""
    k_total = 1 + conv_order_down + conv_order_up
    c_dims = []
    for w in params["layer_weights"]:
        c_dims.append(int(w.shape[0]))
        c_dims.append(int(w.shape[1]))
    c_pad = _round_up(max(c_dims), 8)           # sublane multiple is enough

    blocks = []
    for w in params["layer_weights"]:           # torch layout (C_in, C_out, K)
        c_in, c_out, k = w.shape
        assert k == k_total
        # term order along K is [identity, L_down^1..kd, L_up^1..ku]
        wt = jnp.transpose(w, (2, 1, 0)).astype(jnp.float32)   # (K, C_out, C_in)
        wt = jnp.pad(wt, ((0, 0), (0, c_pad - c_out), (0, c_pad - c_in)))
        blocks.append(wt)
    w_stacked = jnp.concatenate(blocks, axis=0).astype(compute_dtype)  # (L*K, C_pad, C_pad)

    lin_w = params["lin_w"].astype(jnp.float32)                 # (1, C_out)
    lin_w_col = jnp.pad(lin_w.T, ((0, c_pad - lin_w.shape[1]), (0, 0)))  # (C_pad, 1)
    lin_b = params["lin_b"].reshape(1).astype(jnp.float32)      # (1,)

    return {
        "c_pad": c_pad,
        "k_total": k_total,
        "n_layers": len(params["layer_weights"]),
        "w_stacked": w_stacked,
        "lin_w_col": lin_w_col,
        "lin_b": lin_b,
        "compute_dtype": compute_dtype,
    }


# ----------------------------------------------------------------------------
# Forward: a single pallas_call
# ----------------------------------------------------------------------------
def scnn_forward(x, lap_down, lap_up, prepared, conv_order_down, conv_order_up):
    n, c_in = x.shape
    c_pad = prepared["c_pad"]
    cdt = prepared["compute_dtype"]

    # Transposed layout: channels on sublanes (padded to c_pad), simplices on lanes.
    x_t = jnp.pad(x.astype(jnp.float32).T, ((0, c_pad - c_in), (0, 0))).astype(cdt)
    # Pre-transpose the Laplacians so the in-kernel chain t^T @ L^T is correct
    # for non-symmetric operators too.
    ld_t = lap_down.astype(jnp.float32).T.astype(cdt)
    lu_t = lap_up.astype(jnp.float32).T.astype(cdt)

    kernel = make_fused_scnn_kernel(
        prepared["n_layers"], conv_order_down, conv_order_up, prepared["k_total"]
    )

    out = pl.pallas_call(
        kernel,
        out_shape=jax.ShapeDtypeStruct((1, 1), jnp.float32),
        in_specs=[
            pl.BlockSpec(memory_space=pltpu.MemorySpace.VMEM),   # x_t
            pl.BlockSpec(memory_space=pltpu.MemorySpace.VMEM),   # L_down^T
            pl.BlockSpec(memory_space=pltpu.MemorySpace.VMEM),   # L_up^T
            pl.BlockSpec(memory_space=pltpu.MemorySpace.VMEM),   # stacked weights
            pl.BlockSpec(memory_space=pltpu.MemorySpace.VMEM),   # lin_w column
            pl.BlockSpec(memory_space=pltpu.MemorySpace.SMEM),   # lin_b scalar
        ],
        out_specs=pl.BlockSpec(memory_space=pltpu.MemorySpace.VMEM),
        # No vmem_limit_bytes override: footprint < 1 MiB; default scoped limit
        # is ample and claiming 64 MiB would be all of v7x's per-TC VMEM.
    )(x_t, ld_t, lu_t, prepared["w_stacked"], prepared["lin_w_col"], prepared["lin_b"])
    return out.reshape(1)


# ----------------------------------------------------------------------------
# Deterministic parameter init (mirrors shapes of SCNN.__init__)
# ----------------------------------------------------------------------------
def xavier_normal(key, shape, gain=1.414):
    # torch convention for a (C_in, C_out, K) tensor:
    #   fan_in = C_out * K, fan_out = C_in * K
    fan_in = shape[1] * shape[2]
    fan_out = shape[0] * shape[2]
    std = gain * np.sqrt(2.0 / (fan_in + fan_out))
    return std * jax.random.normal(key, shape, dtype=jnp.float32)


def init_params(key, in_ch, mid_ch, out_ch, kd, ku, n_layers):
    k_total = 1 + kd + ku
    keys = jax.random.split(key, n_layers + 2)
    layer_weights = [xavier_normal(keys[0], (in_ch, mid_ch, k_total))]
    for i in range(1, n_layers):
        layer_weights.append(xavier_normal(keys[i], (mid_ch, out_ch, k_total)))
    lin_w = 0.1 * jax.random.normal(keys[-2], (1, out_ch), dtype=jnp.float32)
    lin_b = 0.1 * jax.random.normal(keys[-1], (1,), dtype=jnp.float32)
    return {"layer_weights": layer_weights, "lin_w": lin_w, "lin_b": lin_b}


# ----------------------------------------------------------------------------
# Pure-JAX reference (mirrors the PyTorch forward) for a correctness check
# ----------------------------------------------------------------------------
def scnn_forward_ref(x, ld, lu, params, kd, ku):
    for w in params["layer_weights"]:
        cols = [x]  # identity term I @ x
        t = x
        for _ in range(kd):
            t = ld @ t
            cols.append(t)
        t = x
        for _ in range(ku):
            t = lu @ t
            cols.append(t)
        big = jnp.stack(cols, axis=2)                     # (N, C_in, K)
        x = jnp.einsum("nik,iok->no", big, w)
    x1 = x @ params["lin_w"].T + params["lin_b"]          # (N, 1)
    mean = jnp.nanmean(x1, axis=0)
    return jnp.where(jnp.isnan(mean), 0.0, mean)


# ----------------------------------------------------------------------------
if __name__ == "__main__":
    key = jax.random.PRNGKey(0)
    n_simplices = 32
    in_channels = 16
    intermediate_channels = 32
    out_channels = 32
    conv_order_down = 2
    conv_order_up = 2
    n_layers = 2

    kx, kd_key, ku_key, kp = jax.random.split(key, 4)
    x = jax.random.normal(kx, (n_simplices, in_channels), dtype=jnp.float32)
    # symmetric PSD-ish Laplacian-like operators
    a_d = jax.random.normal(kd_key, (n_simplices, n_simplices), dtype=jnp.float32)
    a_u = jax.random.normal(ku_key, (n_simplices, n_simplices), dtype=jnp.float32)
    lap_down = (a_d @ a_d.T) / n_simplices
    lap_up = (a_u @ a_u.T) / n_simplices

    params = init_params(
        kp, in_channels, intermediate_channels, out_channels,
        conv_order_down, conv_order_up, n_layers,
    )

    # ---- f32 mode (default): checked against the pure-JAX reference ----
    prepared = prepare_params(params, conv_order_down, conv_order_up)
    out = scnn_forward(x, lap_down, lap_up, prepared, conv_order_down, conv_order_up)
    out = jax.block_until_ready(out)

    ref = scnn_forward_ref(x, lap_down, lap_up, params, conv_order_down, conv_order_up)
    np.testing.assert_allclose(np.asarray(out), np.asarray(ref), rtol=1e-4, atol=1e-4)

    # ---- optional bf16 mode: run once to make sure it compiles/executes ----
    prepared_bf16 = prepare_params(params, conv_order_down, conv_order_up,
                                   compute_dtype=jnp.bfloat16)
    out_bf16 = scnn_forward(x, lap_down, lap_up, prepared_bf16,
                            conv_order_down, conv_order_up)
    out_bf16 = jax.block_until_ready(out_bf16)
    assert bool(np.isfinite(np.asarray(out_bf16)).all())

    print("KERNEL_OK")
</pallas_src>

<mosaic_0001>
module attributes {stable_mosaic.version = 11 : i64} {
  func.func @kernel(%arg0: memref<32x32xf32, #tpu.memory_space<vmem>>, %arg1: memref<32x32xf32, #tpu.memory_space<vmem>>, %arg2: memref<32x32xf32, #tpu.memory_space<vmem>>, %arg3: memref<10x32x32xf32, #tpu.memory_space<vmem>>, %arg4: memref<32x1xf32, #tpu.memory_space<vmem>>, %arg5: memref<1xf32, #tpu.memory_space<smem>>, %arg6: memref<1x1xf32, #tpu.memory_space<vmem>>) attributes {dimension_semantics = [], scalar_prefetch = 0 : i64, scratch_operands = 0 : i64, tpu.core_type = #tpu.core_type<tc>} {
    %c0 = arith.constant 0 : index
    %c0_0 = arith.constant 0 : index
    %0 = vector.load %arg0[%c0, %c0_0] : memref<32x32xf32, #tpu.memory_space<vmem>>, vector<32x32xf32>
    %c0_1 = arith.constant 0 : index
    %c0_2 = arith.constant 0 : index
    %1 = vector.load %arg1[%c0_1, %c0_2] : memref<32x32xf32, #tpu.memory_space<vmem>>, vector<32x32xf32>
    %c0_3 = arith.constant 0 : index
    %c0_4 = arith.constant 0 : index
    %2 = vector.load %arg2[%c0_3, %c0_4] : memref<32x32xf32, #tpu.memory_space<vmem>>, vector<32x32xf32>
    %c0_5 = arith.constant 0 : index
    %c0_6 = arith.constant 0 : index
    %c0_7 = arith.constant 0 : index
    %3 = vector.load %arg3[%c0_5, %c0_6, %c0_7] : memref<10x32x32xf32, #tpu.memory_space<vmem>>, vector<1x32x32xf32>
    %4 = vector.shape_cast %3 : vector<1x32x32xf32> to vector<32x32xf32>
    %cst = arith.constant dense<0.000000e+00> : vector<32x32xf32>
    %5 = tpu.matmul %4, %0, %cst {dimension_numbers = #tpu.dot_dimension_numbers<[1], [0], [0], [1], [0, 0, 1, 1], [], []>} : vector<32x32xf32>, vector<32x32xf32>, vector<32x32xf32> -> vector<32x32xf32>
    %cst_8 = arith.constant dense<0.000000e+00> : vector<32x32xf32>
    %6 = tpu.matmul %0, %1, %cst_8 {dimension_numbers = #tpu.dot_dimension_numbers<[1], [0], [0], [1], [0, 0, 1, 1], [], []>} : vector<32x32xf32>, vector<32x32xf32>, vector<32x32xf32> -> vector<32x32xf32>
    %c1 = arith.constant 1 : index
    %c0_9 = arith.constant 0 : index
    %c0_10 = arith.constant 0 : index
    %7 = vector.load %arg3[%c1, %c0_9, %c0_10] : memref<10x32x32xf32, #tpu.memory_space<vmem>>, vector<1x32x32xf32>
    %8 = vector.shape_cast %7 : vector<1x32x32xf32> to vector<32x32xf32>
    %cst_11 = arith.constant dense<0.000000e+00> : vector<32x32xf32>
    %9 = tpu.matmul %8, %6, %cst_11 {dimension_numbers = #tpu.dot_dimension_numbers<[1], [0], [0], [1], [0, 0, 1, 1], [], []>} : vector<32x32xf32>, vector<32x32xf32>, vector<32x32xf32> -> vector<32x32xf32>
    %10 = arith.addf %5, %9 : vector<32x32xf32>
    %cst_12 = arith.constant dense<0.000000e+00> : vector<32x32xf32>
    %11 = tpu.matmul %6, %1, %cst_12 {dimension_numbers = #tpu.dot_dimension_numbers<[1], [0], [0], [1], [0, 0, 1, 1], [], []>} : vector<32x32xf32>, vector<32x32xf32>, vector<32x32xf32> -> vector<32x32xf32>
    %c2 = arith.constant 2 : index
    %c0_13 = arith.constant 0 : index
    %c0_14 = arith.constant 0 : index
    %12 = vector.load %arg3[%c2, %c0_13, %c0_14] : memref<10x32x32xf32, #tpu.memory_space<vmem>>, vector<1x32x32xf32>
    %13 = vector.shape_cast %12 : vector<1x32x32xf32> to vector<32x32xf32>
    %cst_15 = arith.constant dense<0.000000e+00> : vector<32x32xf32>
    %14 = tpu.matmul %13, %11, %cst_15 {dimension_numbers = #tpu.dot_dimension_numbers<[1], [0], [0], [1], [0, 0, 1, 1], [], []>} : vector<32x32xf32>, vector<32x32xf32>, vector<32x32xf32> -> vector<32x32xf32>
    %15 = arith.addf %10, %14 : vector<32x32xf32>
    %cst_16 = arith.constant dense<0.000000e+00> : vector<32x32xf32>
    %16 = tpu.matmul %0, %2, %cst_16 {dimension_numbers = #tpu.dot_dimension_numbers<[1], [0], [0], [1], [0, 0, 1, 1], [], []>} : vector<32x32xf32>, vector<32x32xf32>, vector<32x32xf32> -> vector<32x32xf32>
    %c3 = arith.constant 3 : index
    %c0_17 = arith.constant 0 : index
    %c0_18 = arith.constant 0 : index
    %17 = vector.load %arg3[%c3, %c0_17, %c0_18] : memref<10x32x32xf32, #tpu.memory_space<vmem>>, vector<1x32x32xf32>
    %18 = vector.shape_cast %17 : vector<1x32x32xf32> to vector<32x32xf32>
    %cst_19 = arith.constant dense<0.000000e+00> : vector<32x32xf32>
    %19 = tpu.matmul %18, %16, %cst_19 {dimension_numbers = #tpu.dot_dimension_numbers<[1], [0], [0], [1], [0, 0, 1, 1], [], []>} : vector<32x32xf32>, vector<32x32xf32>, vector<32x32xf32> -> vector<32x32xf32>
    %20 = arith.addf %15, %19 : vector<32x32xf32>
    %cst_20 = arith.constant dense<0.000000e+00> : vector<32x32xf32>
    %21 = tpu.matmul %16, %2, %cst_20 {dimension_numbers = #tpu.dot_dimension_numbers<[1], [0], [0], [1], [0, 0, 1, 1], [], []>} : vector<32x32xf32>, vector<32x32xf32>, vector<32x32xf32> -> vector<32x32xf32>
    %c4 = arith.constant 4 : index
    %c0_21 = arith.constant 0 : index
    %c0_22 = arith.constant 0 : index
    %22 = vector.load %arg3[%c4, %c0_21, %c0_22] : memref<10x32x32xf32, #tpu.memory_space<vmem>>, vector<1x32x32xf32>
    %23 = vector.shape_cast %22 : vector<1x32x32xf32> to vector<32x32xf32>
    %cst_23 = arith.constant dense<0.000000e+00> : vector<32x32xf32>
    %24 = tpu.matmul %23, %21, %cst_23 {dimension_numbers = #tpu.dot_dimension_numbers<[1], [0], [0], [1], [0, 0, 1, 1], [], []>} : vector<32x32xf32>, vector<32x32xf32>, vector<32x32xf32> -> vector<32x32xf32>
    %25 = arith.addf %20, %24 : vector<32x32xf32>
    %c5 = arith.constant 5 : index
    %c0_24 = arith.constant 0 : index
    %c0_25 = arith.constant 0 : index
    %26 = vector.load %arg3[%c5, %c0_24, %c0_25] : memref<10x32x32xf32, #tpu.memory_space<vmem>>, vector<1x32x32xf32>
    %27 = vector.shape_cast %26 : vector<1x32x32xf32> to vector<32x32xf32>
    %cst_26 = arith.constant dense<0.000000e+00> : vector<32x32xf32>
    %28 = tpu.matmul %27, %25, %cst_26 {dimension_numbers = #tpu.dot_dimension_numbers<[1], [0], [0], [1], [0, 0, 1, 1], [], []>} : vector<32x32xf32>, vector<32x32xf32>, vector<32x32xf32> -> vector<32x32xf32>
    %cst_27 = arith.constant dense<0.000000e+00> : vector<32x32xf32>
    %29 = tpu.matmul %25, %1, %cst_27 {dimension_numbers = #tpu.dot_dimension_numbers<[1], [0], [0], [1], [0, 0, 1, 1], [], []>} : vector<32x32xf32>, vector<32x32xf32>, vector<32x32xf32> -> vector<32x32xf32>
    %c6 = arith.constant 6 : index
    %c0_28 = arith.constant 0 : index
    %c0_29 = arith.constant 0 : index
    %30 = vector.load %arg3[%c6, %c0_28, %c0_29] : memref<10x32x32xf32, #tpu.memory_space<vmem>>, vector<1x32x32xf32>
    %31 = vector.shape_cast %30 : vector<1x32x32xf32> to vector<32x32xf32>
    %cst_30 = arith.constant dense<0.000000e+00> : vector<32x32xf32>
    %32 = tpu.matmul %31, %29, %cst_30 {dimension_numbers = #tpu.dot_dimension_numbers<[1], [0], [0], [1], [0, 0, 1, 1], [], []>} : vector<32x32xf32>, vector<32x32xf32>, vector<32x32xf32> -> vector<32x32xf32>
    %33 = arith.addf %28, %32 : vector<32x32xf32>
    %cst_31 = arith.constant dense<0.000000e+00> : vector<32x32xf32>
    %34 = tpu.matmul %29, %1, %cst_31 {dimension_numbers = #tpu.dot_dimension_numbers<[1], [0], [0], [1], [0, 0, 1, 1], [], []>} : vector<32x32xf32>, vector<32x32xf32>, vector<32x32xf32> -> vector<32x32xf32>
    %c7 = arith.constant 7 : index
    %c0_32 = arith.constant 0 : index
    %c0_33 = arith.constant 0 : index
    %35 = vector.load %arg3[%c7, %c0_32, %c0_33] : memref<10x32x32xf32, #tpu.memory_space<vmem>>, vector<1x32x32xf32>
    %36 = vector.shape_cast %35 : vector<1x32x32xf32> to vector<32x32xf32>
    %cst_34 = arith.constant dense<0.000000e+00> : vector<32x32xf32>
    %37 = tpu.matmul %36, %34, %cst_34 {dimension_numbers = #tpu.dot_dimension_numbers<[1], [0], [0], [1], [0, 0, 1, 1], [], []>} : vector<32x32xf32>, vector<32x32xf32>, vector<32x32xf32> -> vector<32x32xf32>
    %38 = arith.addf %33, %37 : vector<32x32xf32>
    %cst_35 = arith.constant dense<0.000000e+00> : vector<32x32xf32>
    %39 = tpu.matmul %25, %2, %cst_35 {dimension_numbers = #tpu.dot_dimension_numbers<[1], [0], [0], [1], [0, 0, 1, 1], [], []>} : vector<32x32xf32>, vector<32x32xf32>, vector<32x32xf32> -> vector<32x32xf32>
    %c8 = arith.constant 8 : index
    %c0_36 = arith.constant 0 : index
    %c0_37 = arith.constant 0 : index
    %40 = vector.load %arg3[%c8, %c0_36, %c0_37] : memref<10x32x32xf32, #tpu.memory_space<vmem>>, vector<1x32x32xf32>
    %41 = vector.shape_cast %40 : vector<1x32x32xf32> to vector<32x32xf32>
    %cst_38 = arith.constant dense<0.000000e+00> : vector<32x32xf32>
    %42 = tpu.matmul %41, %39, %cst_38 {dimension_numbers = #tpu.dot_dimension_numbers<[1], [0], [0], [1], [0, 0, 1, 1], [], []>} : vector<32x32xf32>, vector<32x32xf32>, vector<32x32xf32> -> vector<32x32xf32>
    %43 = arith.addf %38, %42 : vector<32x32xf32>
    %cst_39 = arith.constant dense<0.000000e+00> : vector<32x32xf32>
    %44 = tpu.matmul %39, %2, %cst_39 {dimension_numbers = #tpu.dot_dimension_numbers<[1], [0], [0], [1], [0, 0, 1, 1], [], []>} : vector<32x32xf32>, vector<32x32xf32>, vector<32x32xf32> -> vector<32x32xf32>
    %c9 = arith.constant 9 : index
    %c0_40 = arith.constant 0 : index
    %c0_41 = arith.constant 0 : index
    %45 = vector.load %arg3[%c9, %c0_40, %c0_41] : memref<10x32x32xf32, #tpu.memory_space<vmem>>, vector<1x32x32xf32>
    %46 = vector.shape_cast %45 : vector<1x32x32xf32> to vector<32x32xf32>
    %cst_42 = arith.constant dense<0.000000e+00> : vector<32x32xf32>
    %47 = tpu.matmul %46, %44, %cst_42 {dimension_numbers = #tpu.dot_dimension_numbers<[1], [0], [0], [1], [0, 0, 1, 1], [], []>} : vector<32x32xf32>, vector<32x32xf32>, vector<32x32xf32> -> vector<32x32xf32>
    %48 = arith.addf %43, %47 : vector<32x32xf32>
    %c0_43 = arith.constant 0 : index
    %c0_44 = arith.constant 0 : index
    %49 = vector.load %arg4[%c0_43, %c0_44] : memref<32x1xf32, #tpu.memory_space<vmem>>, vector<32x1xf32>
    %50 = vector.broadcast %49 : vector<32x1xf32> to vector<32x32xf32>
    %51 = arith.mulf %48, %50 : vector<32x32xf32>
    %cst_45 = arith.constant dense<0.000000e+00> : vector<32xf32>
    %52 = vector.multi_reduction <add>, %51, %cst_45 [0] : vector<32x32xf32> to vector<32xf32>
    %53 = vector.shape_cast %52 : vector<32xf32> to vector<1x32xf32>
    %c0_46 = arith.constant 0 : index
    %54 = memref.load %arg5[%c0_46] : memref<1xf32, #tpu.memory_space<smem>>
    %55 = vector.broadcast %54 : f32 to vector<1x32xf32>
    %56 = arith.addf %53, %55 : vector<1x32xf32>
    %57 = arith.cmpf one, %56, %56 : vector<1x32xf32>
    %cst_47 = arith.constant 0.000000e+00 : f32
    %cst_48 = arith.constant 1.000000e+00 : f32
    %58 = vector.broadcast %cst_47 : f32 to vector<1x32xf32>
    %59 = vector.broadcast %cst_48 : f32 to vector<1x32xf32>
    %60 = arith.select %57, %58, %59 : vector<1x32xi1>, vector<1x32xf32>
    %cst_49 = arith.constant dense<0.000000e+00> : vector<1xf32>
    %61 = vector.multi_reduction <add>, %60, %cst_49 [1] : vector<1x32xf32> to vector<1xf32>
    %62 = vector.shape_cast %61 : vector<1xf32> to vector<1x1xf32>
    %cst_50 = arith.constant 0.000000e+00 : f32
    %63 = vector.broadcast %cst_50 : f32 to vector<1x32xf32>
    %64 = arith.select %57, %63, %56 : vector<1x32xi1>, vector<1x32xf32>
    %cst_51 = arith.constant dense<0.000000e+00> : vector<1xf32>
    %65 = vector.multi_reduction <add>, %64, %cst_51 [1] : vector<1x32xf32> to vector<1xf32>
    %66 = vector.shape_cast %65 : vector<1xf32> to vector<1x1xf32>
    %cst_52 = arith.constant 0.000000e+00 : f32
    %67 = vector.broadcast %cst_52 : f32 to vector<1x1xf32>
    %68 = arith.cmpf ogt, %62, %67 : vector<1x1xf32>
    %69 = arith.divf %66, %62 : vector<1x1xf32>
    %cst_53 = arith.constant 0.000000e+00 : f32
    %70 = vector.broadcast %cst_53 : f32 to vector<1x1xf32>
    %71 = arith.select %68, %69, %70 : vector<1x1xi1>, vector<1x1xf32>
    %c0_54 = arith.constant 0 : index
    %c0_55 = arith.constant 0 : index
    %72 = vector.load %arg6[%c0_54, %c0_55] : memref<1x1xf32, #tpu.memory_space<vmem>>, vector<1x1xf32>
    tpu.vector_store %arg6[%c0_54, %c0_55], %71 {strides = array<i32>} : memref<1x1xf32, #tpu.memory_space<vmem>>, vector<1x1xf32>,
    return
  }
}

</mosaic_0001>

<bundles_post_ra>
// kernel: tpu_custom_call.1
= control target key start
LH: loop header
LB: loop body
LE: loop exit
PB: predicated region body
PF: predicated region fallthrough
CT: control target
= control target key end

     0   :  { %12 = vsyncpa [#allocation4], 0  ;;  %s2821_s0 = inlined_call_operand.vmem [shape: f32[32,32], index: 0, kind: input, shape index: {}]   ;;  %s2822_s1 = inlined_call_operand.hbm [shape: f32[32,32], index: 1, kind: input, shape index: {}]   ;;  %s2823_s2 = inlined_call_operand.hbm [shape: f32[32,32], index: 2, kind: input, shape index: {}]   ;;  %s2824_s3 = inlined_call_operand.hbm [shape: f32[10,32,32], index: 3, kind: input, shape index: {}]   ;;  %s2825_s4 = inlined_call_operand.vmem [shape: f32[32,1], index: 4, kind: input, shape index: {}]   ;;  %s2826_s5 = inlined_call_operand.<no memory space> [shape: f32[1], index: 5, kind: input, shape index: {}]   ;;  %s2827_s6 = inlined_call_operand.hbm [shape: f32[1,1], index: 6, kind: output, shape index: {}]  }
   0x1   :  { %13 = vsyncpa [#allocation7], 0 }
   0x2   :  { %14 = vsyncpa [#allocation5], 0  ;;  %s2515_s21 = smov [#allocation6]   ;;  %s2516_s23 = smov [#allocation3]  }
   0x3   :  { %s34_s22 = sshll.u32 %s2515_s21, 4  ;;  %s22_s24 = sshll.u32 %s2516_s23, 4  ;;  %s35_s22 = int_to_ptr.vmem [resolvable:$true] %s34_s22  ;;  %s23_s24 = int_to_ptr.vmem [resolvable:$true] %s22_s24 }
   0x4   :  { %s2437_s25 = scalar_lea.vmem %s35_s22, 512  ;;  %p2442_p1 = scmp.lt.s32.totalorder %s35_s22, %s35_s22 }
   0x5   :  { %p2438_p0 = scmp.ne.s32.totalorder %s35_s22, %s2437_s25  ;;  %p2443_p2 = scmp.lt.s32.totalorder %s2437_s25, %s2437_s25 }
   0x7   :  { %p2444_p3 = por %p2443_p2, %p2442_p1 }
   0x9   :  { %p2445_p4 = pnand %p2444_p3, %p2438_p0 }
   0xb   :  { %2448 = shalt.err (!%p2445_p4)
}
   0xc   :  { %s2517_s26 = smov 128   ;;  %s2518_s27 = smov 8  }
   0xd   :  { %40 = dma.hbm_to_vmem [thread:$0]  %s2823_s2, 512, %s35_s22, [#allocation7], %s2517_s26, %s2517_s26, %s2518_s27  }
   0xe   :  { %s2457_s30 = scalar_lea.vmem %s23_s24, 512  ;;  %p2462_p6 = scmp.lt.s32.totalorder %s23_s24, %s23_s24 }
   0xf   :  { %p2458_p5 = scmp.ne.s32.totalorder %s23_s24, %s2457_s30  ;;  %p2463_p7 = scmp.lt.s32.totalorder %s2457_s30, %s2457_s30 }
  0x11   :  { %p2464_p8 = por %p2463_p7, %p2462_p6 }
  0x13   :  { %p2465_p9 = pnand %p2464_p8, %p2458_p5 }
  0x15   :  { %2468 = shalt.err (!%p2465_p9)
}
  0x16   :  { %28 = dma.hbm_to_vmem [thread:$0]  %s2822_s1, 512, %s23_s24, [#allocation4], %s2517_s26, %s2517_s26, %s2518_s27  }
  0x17   :  { %s2519_s9 = smov [#allocation8]  }
  0x18   :  { %s46_s10 = sshll.u32 %s2519_s9, 4  ;;  %s47_s10 = int_to_ptr.vmem [resolvable:$true] %s46_s10 }
  0x19   :  { %s2477_s11 = scalar_lea.vmem %s47_s10, 5120  ;;  %p2482_p11 = scmp.lt.s32.totalorder %s47_s10, %s47_s10 }
  0x1a   :  { %p2478_p10 = scmp.ne.s32.totalorder %s47_s10, %s2477_s11  ;;  %p2483_p12 = scmp.lt.s32.totalorder %s2477_s11, %s2477_s11 }
  0x1c   :  { %p2484_p13 = por %p2483_p12, %p2482_p11 }
  0x1e   :  { %p2485_p0 = pnand %p2484_p13, %p2478_p10 }
  0x20   :  { %2488 = shalt.err (!%p2485_p0)
}
  0x21   :  { %52 = dma.hbm_to_vmem [thread:$0]  %s2824_s3, 5120, %s47_s10, [#allocation7], %s2517_s26, %s2517_s26, %s2518_s27  }
  0x22   :  { %2509 = dma.done.wait [#allocation4], 512  }
  0x23   :  { %2510 = vsyncadd [#allocation4], 4294966784 }
  0x24   :  { %2511 = dma.done.wait [#allocation7], 5632  }
  0x25   :  { %2512 = vsyncadd [#allocation7], 4294961664  ;;  %vm82_vm0 = vcmask 261120   ;;  %v2567_v0 = vld [vmem:[#allocation3 + $0x18] sm:$0xff]  ;;  %v2569_v1 = vld [vmem:[#allocation3 + $0x10] sm:$0xff]  ;;  %s2522_s27 = smov [#allocation9]  }
  0x26   :  { %2165 = vmatprep.subr.mxu0 %v2567_v0  ;;  %v2575_v2 = vld [vmem:[%s2821_s0] sm:$0xff]  ;;  %v2578_v3 = vld [vmem:[#allocation3 + $0x8] sm:$0xff]  ;;  %v2597_v6 = vld [vmem:[%s2821_s0 + $0x10] sm:$0xff]  ;;  %s1939_s28 = sshll.u32 %s2522_s27, 4  ;;  %vm1931_vm2 = vcmask 0   ;;  %s1940_s28 = int_to_ptr.vmem [resolvable:$true] %s1939_s28 }
  0x27   :  { %2166 = vmatpush3.msra.mxu0 %v2567_v0  ;;  %2173 = vmatprep.mubr.msk.f32.mxu0 %vm82_vm0, %v2575_v2  ;;  %v2584_v4 = vld [vmem:[#allocation3] sm:$0xff]  ;;  %v2591_v5 = vld [vmem:[%s2821_s0 + $0x8] sm:$0xff]  ;;  %v2603_v7 = vld [vmem:[%s2821_s0 + $0x18] sm:$0xff]  ;;  %s2493_s29 = scalar_lea.vmem %s1940_s28, 32  ;;  %p2494_p2 = scmp.lt.s32.totalorder %s1940_s28, %s1940_s28 }
  0x28   :  { %2167 = vmatprep.subr.mxu0 %v2569_v1  ;;  %v181_v8 = vld [vmem:[#allocation8 + $0x20] sm:$0xff]  ;;  %v79_v10 = vld [vmem:[#allocation8 + $0x8] sm:$0xff]  ;;  %v80_v11 = vld [vmem:[#allocation8 + $0x10] sm:$0xff] }
  0x29   :  { %2168 = vmatpush3.msra.mxu0 %v2569_v1  ;;  %v78_v9 = vld [vmem:[#allocation8] sm:$0xff]  ;;  %2187 = vmatprep.mubr.msk.f32.mxu1 %vm82_vm0, %v181_v8  ;;  %v81_v12 = vld [vmem:[#allocation8 + $0x18] sm:$0xff]  ;;  %v182_v17 = vld [vmem:[#allocation8 + $0x28] sm:$0xff] }
  0x2a   :  { %2169 = vmatprep.subr.mxu0 %v2578_v3  ;;  %v183_v18 = vld [vmem:[#allocation8 + $0x30] sm:$0xff]  ;;  %v184_v19 = vld [vmem:[#allocation8 + $0x38] sm:$0xff]  ;;  %v2644_v22 = vld [vmem:[#allocation6 + $0x8] sm:$0xff] }
  0x2b   :  { %2170 = vmatpush3.msra.mxu0 %v2578_v3  ;;  %v2634_v20 = vld [vmem:[#allocation6 + $0x18] sm:$0xff]  ;;  %v2638_v21 = vld [vmem:[#allocation6 + $0x10] sm:$0xff]  ;;  %v2648_v23 = vld [vmem:[#allocation6] sm:$0xff] }
  0x2c   :  { %2171 = vmatprep.subr.mxu0 %v2584_v4  ;;  %v477_v24 = vld [vmem:[#allocation8 + $0x40] sm:$0xff]  ;;  %v478_v35 = vld [vmem:[#allocation8 + $0x48] sm:$0xff]  ;;  %v479_v36 = vld [vmem:[#allocation8 + $0x50] sm:$0xff] }
  0x2d   :  { %2172 = vmatpush3.msra.mxu0 %v2584_v4  ;;  %v480_v39 = vld [vmem:[#allocation8 + $0x58] sm:$0xff]  ;;  %v668_v40 = vld [vmem:[#allocation8 + $0x60] sm:$0xff]  ;;  %v669_v41 = vld [vmem:[#allocation8 + $0x68] sm:$0xff] }
  0x2e   :  { %2174 = vmatmul.mubr.msk.f32.vlgmr.msra.gmra.mxu0 %vm82_vm0, %v2591_v5  ;;  %2193 = vmatprep.subr.mxu0 %v2603_v7  ;;  %v670_v42 = vld [vmem:[#allocation8 + $0x70] sm:$0xff]  ;;  %v671_v43 = vld [vmem:[#allocation8 + $0x78] sm:$0xff]  ;;  %v871_v44 = vld [vmem:[#allocation8 + $0x80] sm:$0xff] }
  0x2f   :  { %2176 = vmatprep.mubr.msk.f32.mxu0 %vm82_vm0, %v2597_v6  ;;  %2194 = vmatpush3.msra.mxu0 %v2603_v7  ;;  %v872_v49 = vld [vmem:[#allocation8 + $0x88] sm:$0xff]  ;;  %v873_v50 = vld [vmem:[#allocation8 + $0x90] sm:$0xff]  ;;  %v874_v51 = vld [vmem:[#allocation8 + $0x98] sm:$0xff] }
  0x30   :  { %2195 = vmatprep.subr.mxu0 %v2597_v6 }
  0x31   :  { %2196 = vmatpush3.msra.mxu0 %v2597_v6 }
  0x32   :  { %2177 = vmatmul.mubr.msk.f32.gmra.mxu0 %vm82_vm0, %v2603_v7  ;;  %2197 = vmatprep.subr.mxu0 %v2591_v5 }
  0x33   :  { %2198 = vmatpush3.msra.mxu0 %v2591_v5  ;;  %2201 = vmatprep.mubr.msk.f32.mxu0 %vm82_vm0, %v78_v9 }
  0x34   :  { %2199 = vmatprep.subr.mxu0 %v2575_v2 }
  0x35   :  { %2200 = vmatpush3.msra.mxu0 %v2575_v2 }
  0x36   :  { %2202 = vmatmul.mubr.msk.f32.vlgmr.msra.gmra.mxu0 %vm82_vm0, %v79_v10 }
  0x37   :  { %2204 = vmatprep.mubr.msk.f32.mxu0 %vm82_vm0, %v80_v11 }
  0x3a   :  { %2205 = vmatmul.mubr.msk.f32.gmra.mxu0 %vm82_vm0, %v81_v12 }
  0x3b   :  { %2229 = vmatprep.mubr.msk.f32.mxu0 %vm82_vm0, %v477_v24 }
  0xee   :  { %v2175_v13 = vpop.f32.mrf.mxu0 }
  0xf0   :  { %v161_v14 = vpop.f32.mrf.mxu0 }
  0xf2   :  { %v2178_v15 = vpop.f32.mrf.mxu0 }
  0xf3   :  { %2179 = vmatprep.subr.mxu1 %v2178_v15 }
  0xf4   :  { %v171_v16 = vpop.f32.mrf.mxu0  ;;  %2180 = vmatpush3.msra.mxu1 %v2178_v15 }
  0xf5   :  { %2181 = vmatprep.subr.mxu1 %v171_v16 }
  0xf6   :  { %2182 = vmatpush3.msra.mxu1 %v171_v16  ;;  %v2203_v52 = vpop.f32.mrf.mxu0 }
  0xf7   :  { %2183 = vmatprep.subr.mxu1 %v2175_v13 }
  0xf8   :  { %2184 = vmatpush3.msra.mxu1 %v2175_v13  ;;  %v360_v53 = vpop.f32.mrf.mxu0 }
  0xf9   :  { %2185 = vmatprep.subr.mxu1 %v161_v14 }
  0xfa   :  { %2186 = vmatpush3.msra.mxu1 %v161_v14  ;;  %v2206_v54 = vpop.f32.mrf.mxu0 }
  0xfb   :  { %2188 = vmatmul.mubr.msk.f32.vlgmr.msra.gmra.mxu1 %vm82_vm0, %v182_v17  ;;  %2207 = vmatprep.subr.mxu1 %v2567_v0 }
  0xfc   :  { %2208 = vmatpush3.msra.mxu1 %v2567_v0  ;;  %2190 = vmatprep.mubr.msk.f32.mxu1 %vm82_vm0, %v183_v18  ;;  %v370_v55 = vpop.f32.mrf.mxu0 }
  0xfd   :  { %2209 = vmatprep.subr.mxu1 %v2569_v1 }
  0xfe   :  { %2210 = vmatpush3.msra.mxu1 %v2569_v1 }
  0xff   :  { %2191 = vmatmul.mubr.msk.f32.gmra.mxu1 %vm82_vm0, %v184_v19  ;;  %2211 = vmatprep.subr.mxu1 %v2578_v3 }
 0x100   :  { %2212 = vmatpush3.msra.mxu1 %v2578_v3  ;;  %2215 = vmatprep.mubr.msk.f32.mxu1 %vm82_vm0, %v161_v14 }
 0x101   :  { %2213 = vmatprep.subr.mxu1 %v2584_v4 }
 0x102   :  { %2214 = vmatpush3.msra.mxu1 %v2584_v4 }
 0x103   :  { %2216 = vmatmul.mubr.msk.f32.vlgmr.msra.gmra.mxu1 %vm82_vm0, %v2175_v13  ;;  %2235 = vmatprep.subr.mxu1 %v2634_v20 }
 0x104   :  { %2218 = vmatprep.mubr.msk.f32.mxu1 %vm82_vm0, %v171_v16  ;;  %2236 = vmatpush3.msra.mxu1 %v2634_v20 }
 0x105   :  { %2237 = vmatprep.subr.mxu1 %v2638_v21 }
 0x106   :  { %2238 = vmatpush3.msra.mxu1 %v2638_v21 }
 0x107   :  { %2219 = vmatmul.mubr.msk.f32.gmra.mxu1 %vm82_vm0, %v2178_v15  ;;  %2239 = vmatprep.subr.mxu1 %v2644_v22 }
 0x108   :  { %2240 = vmatpush3.msra.mxu1 %v2644_v22  ;;  %2243 = vmatprep.mubr.msk.f32.mxu1 %vm82_vm0, %v2575_v2 }
 0x109   :  { %2241 = vmatprep.subr.mxu1 %v2648_v23 }
 0x10a   :  { %2242 = vmatpush3.msra.mxu1 %v2648_v23 }
 0x10b   :  { %2244 = vmatmul.mubr.msk.f32.vlgmr.msra.gmra.mxu1 %vm82_vm0, %v2591_v5  ;;  %2263 = vmatprep.subr.mxu1 %v2634_v20 }
 0x10c   :  { %2246 = vmatprep.mubr.msk.f32.mxu1 %vm82_vm0, %v2597_v6  ;;  %2264 = vmatpush3.msra.mxu1 %v2634_v20 }
 0x10d   :  { %2265 = vmatprep.subr.mxu1 %v2638_v21 }
 0x10e   :  { %2266 = vmatpush3.msra.mxu1 %v2638_v21 }
 0x10f   :  { %2247 = vmatmul.mubr.msk.f32.gmra.mxu1 %vm82_vm0, %v2603_v7  ;;  %2267 = vmatprep.subr.mxu1 %v2644_v22 }
 0x110   :  { %2268 = vmatpush3.msra.mxu1 %v2644_v22 }
 0x111   :  { %2269 = vmatprep.subr.mxu1 %v2648_v23 }
 0x112   :  { %2270 = vmatpush3.msra.mxu1 %v2648_v23 }
 0x113   :  { %2291 = vmatprep.subr.mxu1 %v2567_v0 }
 0x1bb   :  { %v2673_v25 = vpop.f32.mrf.mxu1 }
 0x1bc   :  { %v366_v2 = vadd.f32 %v2203_v52, %v2673_v25  ;;  %v1769_v52 = vld [vmem:[#allocation8 + $0x120] sm:$0xff] }
 0x1bd   :  { %v2675_v26 = vpop.f32.mrf.mxu1 }
 0x1be   :  { %v361_v63 = vadd.f32 %v360_v53, %v2675_v26  ;;  %v1874_v53 = vld [vmem:[%s2825_s4] sm:$0xff] }
 0x1bf   :  { %v2677_v27 = vpop.f32.mrf.mxu1 }
 0x1c0   :  { %v376_v6 = vadd.f32 %v2206_v54, %v2677_v27  ;;  %v1876_v54 = vld [vmem:[%s2825_s4 + $0x10] sm:$0xff] }
 0x1c1   :  { %v2679_v28 = vpop.f32.mrf.mxu1 }
 0x1c2   :  { %v371_v10 = vadd.f32 %v370_v55, %v2679_v28  ;;  %v1079_v28 = vld [vmem:[#allocation8 + $0xc0] sm:$0xff]  ;;  %v2520_v55 = vmov 0  }
 0x1c3   :  { %v2217_v29 = vpop.f32.mrf.mxu1  ;;  %2425 = vset.pattern.permute.xlu0 %v2520_v55  ;;  %2426 = vset.pattern.permute.xlu1 %v2520_v55 }
 0x1c4   :  { %1880 = vperm.xlu0 %2425, %v1874_v53   ;;  %1890 = vperm.xlu1 %2426, %v1876_v54   ;;  %v1916_v53 = vstv %s2826_s5  ;;  %s2489_s5 = scalar_lea.vmem %s1940_s28, 16 }
 0x1c5   :  { %v457_v30 = vpop.f32.mrf.mxu1  ;;  %p2490_p1 = scmp.ne.s32.totalorder %s1940_s28, %s2489_s5  ;;  %p2495_p3 = scmp.lt.s32.totalorder %s2493_s29, %s2489_s5 }
 0x1c7   :  { %v2220_v31 = vpop.f32.mrf.mxu1  ;;  %p2496_p4 = por %p2495_p3, %p2494_p2 }
 0x1c8   :  { %2221 = vmatprep.subr.mxu0 %v2220_v31 }
 0x1c9   :  { %v467_v32 = vpop.f32.mrf.mxu1  ;;  %2222 = vmatpush3.msra.mxu0 %v2220_v31  ;;  %v979_v31 = vld [vmem:[#allocation8 + $0xb0] sm:$0xff]  ;;  %p2497_p5 = pnand %p2496_p4, %p2490_p1 }
 0x1ca   :  { %2223 = vmatprep.subr.mxu0 %v467_v32 }
 0x1cb   :  { %2224 = vmatpush3.msra.mxu0 %v467_v32  ;;  %v2245_v33 = vpop.f32.mrf.mxu1  ;;  %v980_v32 = vld [vmem:[#allocation8 + $0xb8] sm:$0xff] }
 0x1cc   :  { %2225 = vmatprep.subr.mxu0 %v2217_v29 }
 0x1cd   :  { %2226 = vmatpush3.msra.mxu0 %v2217_v29  ;;  %v648_v34 = vpop.f32.mrf.mxu1  ;;  %v977_v29 = vld [vmem:[#allocation8 + $0xa0] sm:$0xff] }
 0x1ce   :  { %2227 = vmatprep.subr.mxu0 %v457_v30  ;;  %2271 = vmatprep.mubr.msk.f32.mxu1 %vm82_vm0, %v648_v34 }
 0x1cf   :  { %2228 = vmatpush3.msra.mxu0 %v457_v30  ;;  %v2248_v37 = vpop.f32.mrf.mxu1  ;;  %2272 = vmatmul.mubr.msk.f32.vlgmr.msra.gmra.mxu1 %vm82_vm0, %v2245_v33  ;;  %v978_v30 = vld [vmem:[#allocation8 + $0xa8] sm:$0xff] }
 0x1d0   :  { %2230 = vmatmul.mubr.msk.f32.vlgmr.msra.gmra.mxu0 %vm82_vm0, %v478_v35  ;;  %2249 = vmatprep.subr.mxu0 %v2248_v37 }
 0x1d1   :  { %v658_v38 = vpop.f32.mrf.mxu1  ;;  %2250 = vmatpush3.msra.mxu0 %v2248_v37  ;;  %2232 = vmatprep.mubr.msk.f32.mxu0 %vm82_vm0, %v479_v36 }
 0x1d2   :  { %2251 = vmatprep.subr.mxu0 %v658_v38  ;;  %2274 = vmatprep.mubr.msk.f32.mxu1 %vm82_vm0, %v658_v38 }
 0x1d3   :  { %2252 = vmatpush3.msra.mxu0 %v658_v38  ;;  %2275 = vmatmul.mubr.msk.f32.gmra.mxu1 %vm82_vm0, %v2248_v37  ;;  %v1080_v37 = vld [vmem:[#allocation8 + $0xc8] sm:$0xff]  ;;  %v1081_v38 = vld [vmem:[#allocation8 + $0xd0] sm:$0xff] }
 0x1d4   :  { %2233 = vmatmul.mubr.msk.f32.gmra.mxu0 %vm82_vm0, %v480_v39  ;;  %2253 = vmatprep.subr.mxu0 %v2245_v33  ;;  %v1082_v39 = vld [vmem:[#allocation8 + $0xd8] sm:$0xff] }
 0x1d5   :  { %2254 = vmatpush3.msra.mxu0 %v2245_v33  ;;  %2257 = vmatprep.mubr.msk.f32.mxu0 %vm82_vm0, %v668_v40 }
 0x1d6   :  { %2255 = vmatprep.subr.mxu0 %v648_v34  ;;  %2292 = vmatpush3.msra.mxu1 %v2567_v0 }
 0x1d7   :  { %2256 = vmatpush3.msra.mxu0 %v648_v34  ;;  %2293 = vmatprep.subr.mxu1 %v2569_v1 }
 0x1d8   :  { %2258 = vmatmul.mubr.msk.f32.vlgmr.msra.gmra.mxu0 %vm82_vm0, %v669_v41  ;;  %2294 = vmatpush3.msra.mxu1 %v2569_v1 }
 0x1d9   :  { %2260 = vmatprep.mubr.msk.f32.mxu0 %vm82_vm0, %v670_v42  ;;  %2295 = vmatprep.subr.mxu1 %v2578_v3 }
 0x1da   :  { %2296 = vmatpush3.msra.mxu1 %v2578_v3 }
 0x1db   :  { %2297 = vmatprep.subr.mxu1 %v2584_v4 }
 0x1dc   :  { %2261 = vmatmul.mubr.msk.f32.gmra.mxu0 %vm82_vm0, %v671_v43  ;;  %2298 = vmatpush3.msra.mxu1 %v2584_v4  ;;  %v1376_v43 = vld [vmem:[#allocation8 + $0xe8] sm:$0xff] }
 0x1dd   :  { %2285 = vmatprep.mubr.msk.f32.mxu0 %vm82_vm0, %v871_v44  ;;  %v1377_v44 = vld [vmem:[#allocation8 + $0xf0] sm:$0xff] }
 0x28f   :  { %v2273_v45 = vpop.f32.mrf.mxu1 }
 0x290   :  { %v2231_v56 = vpop.f32.mrf.mxu0 }
 0x291   :  { %v851_v46 = vpop.f32.mrf.mxu1  ;;  %v579_v8 = vadd.f32 %v2231_v56, %v366_v2  ;;  %v1875_v56 = vld [vmem:[%s2825_s4 + $0x8] sm:$0xff]  ;;  %v1772_v2 = vld [vmem:[#allocation8 + $0x138] sm:$0xff] }
 0x292   :  { %v559_v57 = vpop.f32.mrf.mxu0  ;;  %1885 = vperm.xlu0 %2425, %v1875_v56  }
 0x293   :  { %v2276_v47 = vpop.f32.mrf.mxu1  ;;  %v578_v7 = vadd.f32 %v559_v57, %v361_v63  ;;  %v1877_v57 = vld [vmem:[%s2825_s4 + $0x18] sm:$0xff]  ;;  %v1771_v63 = vld [vmem:[#allocation8 + $0x130] sm:$0xff] }
 0x294   :  { %2277 = vmatprep.subr.mxu0 %v2276_v47  ;;  %v2234_v58 = vpop.f32.mrf.mxu0  ;;  %1895 = vperm.xlu1 %2426, %v1877_v57   ;;  %v2521_v57 = vmov 1.0  }
 0x295   :  { %v861_v48 = vpop.f32.mrf.mxu1  ;;  %2278 = vmatpush3.msra.mxu0 %v2276_v47  ;;  %v581_v11 = vadd.f32 %v2234_v58, %v376_v6  ;;  %v1378_v47 = vld [vmem:[#allocation8 + $0xf8] sm:$0xff] }
 0x296   :  { %2279 = vmatprep.subr.mxu0 %v861_v48  ;;  %v569_v59 = vpop.f32.mrf.mxu0 }
 0x297   :  { %2280 = vmatpush3.msra.mxu0 %v861_v48  ;;  %v580_v15 = vadd.f32 %v569_v59, %v371_v10  ;;  %v1566_v48 = vld [vmem:[#allocation8 + $0x100] sm:$0xff] }
 0x298   :  { %2281 = vmatprep.subr.mxu0 %v2273_v45  ;;  %v2259_v60 = vpop.f32.mrf.mxu0 }
 0x299   :  { %2282 = vmatpush3.msra.mxu0 %v2273_v45  ;;  %v770_v13 = vadd.f32 %v2259_v60, %v579_v8 }
 0x29a   :  { %2283 = vmatprep.subr.mxu0 %v851_v46  ;;  %v750_v61 = vpop.f32.mrf.mxu0 }
 0x29b   :  { %2284 = vmatpush3.msra.mxu0 %v851_v46  ;;  %v769_v12 = vadd.f32 %v750_v61, %v578_v7 }
 0x29c   :  { %2286 = vmatmul.mubr.msk.f32.vlgmr.msra.gmra.mxu0 %vm82_vm0, %v872_v49  ;;  %v2262_v62 = vpop.f32.mrf.mxu0  ;;  %v1567_v49 = vld [vmem:[#allocation8 + $0x108] sm:$0xff] }
 0x29d   :  { %2288 = vmatprep.mubr.msk.f32.mxu0 %vm82_vm0, %v873_v50  ;;  %v772_v16 = vadd.f32 %v2262_v62, %v581_v11  ;;  %v1568_v50 = vld [vmem:[#allocation8 + $0x110] sm:$0xff]  ;;  %v1770_v62 = vld [vmem:[#allocation8 + $0x128] sm:$0xff] }
 0x29e   :  { %v760_v5 = vpop.f32.mrf.mxu0 }
 0x29f   :  { %v771_v24 = vadd.f32 %v760_v5, %v580_v15 }
 0x2a0   :  { %2289 = vmatmul.mubr.msk.f32.gmra.mxu0 %vm82_vm0, %v874_v51  ;;  %v1569_v51 = vld [vmem:[#allocation8 + $0x118] sm:$0xff] }
 0x2a1   :  { %2313 = vmatprep.mubr.msk.f32.mxu0 %vm82_vm0, %v1079_v28  ;;  %v1891_v28 = vpop.permute.xlu1 %1890 }
 0x35c   :  { %v2287_v9 = vpop.f32.mrf.mxu0 }
 0x35d   :  { %v2709_v18 = vadd.f32 %v2287_v9, %v770_v13 }
 0x35e   :  { %v953_v14 = vpop.f32.mrf.mxu0 }
 0x35f   :  { %v2707_v17 = vadd.f32 %v953_v14, %v769_v12 }
 0x360   :  { %v2290_v19 = vpop.f32.mrf.mxu0 }
 0x361   :  { %v2711_v25 = vadd.f32 %v2290_v19, %v772_v16  ;;  %2299 = vmatprep.mubr.msk.f32.mxu1 %vm82_vm0, %v2707_v17  ;;  %v1881_v16 = vpop.permute.xlu0 %1880 }
 0x362   :  { %v963_v26 = vpop.f32.mrf.mxu0  ;;  %2300 = vmatmul.mubr.msk.f32.vlgmr.msra.gmra.mxu1 %vm82_vm0, %v2709_v18 }
 0x363   :  { %v974_v27 = vadd.f32 %v963_v26, %v771_v24  ;;  %2319 = vmatprep.subr.mxu1 %v2711_v25 }
 0x364   :  { %2320 = vmatpush3.msra.mxu1 %v2711_v25 }
 0x365   :  { %2302 = vmatprep.mubr.msk.f32.mxu1 %vm82_vm0, %v974_v27  ;;  %2321 = vmatprep.subr.mxu1 %v974_v27 }
 0x366   :  { %2303 = vmatmul.mubr.msk.f32.gmra.mxu1 %vm82_vm0, %v2711_v25 }
 0x367   :  { %2322 = vmatpush3.msra.mxu1 %v974_v27  ;;  %2327 = vmatprep.mubr.msk.f32.mxu1 %vm82_vm0, %v977_v29 }
 0x368   :  { %2323 = vmatprep.subr.mxu1 %v2709_v18 }
 0x369   :  { %2324 = vmatpush3.msra.mxu1 %v2709_v18 }
 0x36a   :  { %2325 = vmatprep.subr.mxu1 %v2707_v17 }
 0x36b   :  { %2326 = vmatpush3.msra.mxu1 %v2707_v17 }
 0x36c   :  { %2328 = vmatmul.mubr.msk.f32.vlgmr.msra.gmra.mxu1 %vm82_vm0, %v978_v30  ;;  %v1886_v30 = vpop.permute.xlu0 %1885 }
 0x36d   :  { %2330 = vmatprep.mubr.msk.f32.mxu1 %vm82_vm0, %v979_v31 }
 0x370   :  { %2331 = vmatmul.mubr.msk.f32.gmra.mxu1 %vm82_vm0, %v980_v32 }
 0x422   :  { %v2301_v33 = vpop.f32.mrf.mxu1 }
 0x424   :  { %v1059_v34 = vpop.f32.mrf.mxu1 }
 0x426   :  { %v2304_v35 = vpop.f32.mrf.mxu1 }
 0x427   :  { %2305 = vmatprep.subr.mxu0 %v2304_v35 }
 0x428   :  { %v1069_v36 = vpop.f32.mrf.mxu1  ;;  %2306 = vmatpush3.msra.mxu0 %v2304_v35 }
 0x429   :  { %2307 = vmatprep.subr.mxu0 %v1069_v36 }
 0x42a   :  { %2308 = vmatpush3.msra.mxu0 %v1069_v36 }
 0x42b   :  { %2309 = vmatprep.subr.mxu0 %v2301_v33 }
 0x42c   :  { %2310 = vmatpush3.msra.mxu0 %v2301_v33  ;;  %v2329_v5 = vpop.f32.mrf.mxu1 }
 0x42d   :  { %2311 = vmatprep.subr.mxu0 %v1059_v34 }
 0x42e   :  { %2312 = vmatpush3.msra.mxu0 %v1059_v34  ;;  %v1258_v6 = vpop.f32.mrf.mxu1 }
 0x42f   :  { %2314 = vmatmul.mubr.msk.f32.vlgmr.msra.gmra.mxu0 %vm82_vm0, %v1080_v37  ;;  %2333 = vmatprep.subr.mxu0 %v2567_v0 }
 0x430   :  { %2334 = vmatpush3.msra.mxu0 %v2567_v0  ;;  %2316 = vmatprep.mubr.msk.f32.mxu0 %vm82_vm0, %v1081_v38  ;;  %v1375_v0 = vld [vmem:[#allocation8 + $0xe0] sm:$0xff]  ;;  %v2332_v7 = vpop.f32.mrf.mxu1 }
 0x431   :  { %2335 = vmatprep.subr.mxu0 %v2569_v1  ;;  %2355 = vmatprep.mubr.msk.f32.mxu1 %vm82_vm0, %v1375_v0 }
 0x432   :  { %2336 = vmatpush3.msra.mxu0 %v2569_v1  ;;  %v1268_v8 = vpop.f32.mrf.mxu1 }
 0x433   :  { %2317 = vmatmul.mubr.msk.f32.gmra.mxu0 %vm82_vm0, %v1082_v39  ;;  %2337 = vmatprep.subr.mxu0 %v2578_v3 }
 0x434   :  { %2338 = vmatpush3.msra.mxu0 %v2578_v3  ;;  %2341 = vmatprep.mubr.msk.f32.mxu0 %vm82_vm0, %v1059_v34 }
 0x435   :  { %2339 = vmatprep.subr.mxu0 %v2584_v4 }
 0x436   :  { %2340 = vmatpush3.msra.mxu0 %v2584_v4 }
 0x437   :  { %2342 = vmatmul.mubr.msk.f32.vlgmr.msra.gmra.mxu0 %vm82_vm0, %v2301_v33  ;;  %2361 = vmatprep.subr.mxu0 %v2634_v20 }
 0x438   :  { %2344 = vmatprep.mubr.msk.f32.mxu0 %vm82_vm0, %v1069_v36  ;;  %2362 = vmatpush3.msra.mxu0 %v2634_v20 }
 0x439   :  { %2363 = vmatprep.subr.mxu0 %v2638_v21 }
 0x43a   :  { %2364 = vmatpush3.msra.mxu0 %v2638_v21 }
 0x43b   :  { %2345 = vmatmul.mubr.msk.f32.gmra.mxu0 %vm82_vm0, %v2304_v35  ;;  %2365 = vmatprep.subr.mxu0 %v2644_v22 }
 0x43c   :  { %2366 = vmatpush3.msra.mxu0 %v2644_v22  ;;  %2369 = vmatprep.mubr.msk.f32.mxu0 %vm82_vm0, %v2707_v17 }
 0x43d   :  { %2367 = vmatprep.subr.mxu0 %v2648_v23 }
 0x43e   :  { %2368 = vmatpush3.msra.mxu0 %v2648_v23 }
 0x43f   :  { %2370 = vmatmul.mubr.msk.f32.vlgmr.msra.gmra.mxu0 %vm82_vm0, %v2709_v18  ;;  %2389 = vmatprep.subr.mxu0 %v2634_v20 }
 0x440   :  { %2372 = vmatprep.mubr.msk.f32.mxu0 %vm82_vm0, %v974_v27  ;;  %2390 = vmatpush3.msra.mxu0 %v2634_v20 }
 0x441   :  { %2391 = vmatprep.subr.mxu0 %v2638_v21 }
 0x442   :  { %2392 = vmatpush3.msra.mxu0 %v2638_v21 }
 0x443   :  { %2373 = vmatmul.mubr.msk.f32.gmra.mxu0 %vm82_vm0, %v2711_v25  ;;  %2393 = vmatprep.subr.mxu0 %v2644_v22 }
 0x444   :  { %2394 = vmatpush3.msra.mxu0 %v2644_v22 }
 0x445   :  { %2395 = vmatprep.subr.mxu0 %v2648_v23 }
 0x446   :  { %2396 = vmatpush3.msra.mxu0 %v2648_v23 }
 0x4ef   :  { %v2770_v1 = vpop.f32.mrf.mxu0 }
 0x4f0   :  { %v1264_v17 = vadd.f32 %v2329_v5, %v2770_v1 }
 0x4f1   :  { %v2772_v3 = vpop.f32.mrf.mxu0 }
 0x4f2   :  { %v1259_v18 = vadd.f32 %v1258_v6, %v2772_v3 }
 0x4f3   :  { %v2774_v4 = vpop.f32.mrf.mxu0 }
 0x4f4   :  { %v1274_v25 = vadd.f32 %v2332_v7, %v2774_v4  ;;  %v1896_v4 = vpop.permute.xlu1 %1895 }
 0x4f5   :  { %v2776_v20 = vpop.f32.mrf.mxu0 }
 0x4f6   :  { %v1269_v31 = vadd.f32 %v1268_v8, %v2776_v20 }
 0x4f7   :  { %v2343_v21 = vpop.f32.mrf.mxu0 }
 0x4f9   :  { %v1355_v40 = vpop.f32.mrf.mxu0 }
 0x4fb   :  { %v2346_v41 = vpop.f32.mrf.mxu0 }
 0x4fc   :  { %2347 = vmatprep.subr.mxu1 %v2346_v41 }
 0x4fd   :  { %v1365_v22 = vpop.f32.mrf.mxu0  ;;  %2348 = vmatpush3.msra.mxu1 %v2346_v41 }
 0x4fe   :  { %2349 = vmatprep.subr.mxu1 %v1365_v22 }
 0x4ff   :  { %2350 = vmatpush3.msra.mxu1 %v1365_v22  ;;  %v2371_v23 = vpop.f32.mrf.mxu0 }
 0x500   :  { %2351 = vmatprep.subr.mxu1 %v2343_v21 }
 0x501   :  { %2352 = vmatpush3.msra.mxu1 %v2343_v21  ;;  %v1546_v42 = vpop.f32.mrf.mxu0 }
 0x502   :  { %2353 = vmatprep.subr.mxu1 %v1355_v40  ;;  %2397 = vmatprep.mubr.msk.f32.mxu0 %vm82_vm0, %v1546_v42 }
 0x503   :  { %2354 = vmatpush3.msra.mxu1 %v1355_v40  ;;  %v2374_v45 = vpop.f32.mrf.mxu0  ;;  %2398 = vmatmul.mubr.msk.f32.vlgmr.msra.gmra.mxu0 %vm82_vm0, %v2371_v23 }
 0x504   :  { %2356 = vmatmul.mubr.msk.f32.vlgmr.msra.gmra.mxu1 %vm82_vm0, %v1376_v43  ;;  %2375 = vmatprep.subr.mxu1 %v2374_v45 }
 0x505   :  { %v1556_v46 = vpop.f32.mrf.mxu0  ;;  %2376 = vmatpush3.msra.mxu1 %v2374_v45  ;;  %2358 = vmatprep.mubr.msk.f32.mxu1 %vm82_vm0, %v1377_v44 }
 0x506   :  { %2377 = vmatprep.subr.mxu1 %v1556_v46  ;;  %2400 = vmatprep.mubr.msk.f32.mxu0 %vm82_vm0, %v1556_v46 }
 0x507   :  { %2378 = vmatpush3.msra.mxu1 %v1556_v46  ;;  %2401 = vmatmul.mubr.msk.f32.gmra.mxu0 %vm82_vm0, %v2374_v45 }
 0x508   :  { %2359 = vmatmul.mubr.msk.f32.gmra.mxu1 %vm82_vm0, %v1378_v47  ;;  %2379 = vmatprep.subr.mxu1 %v2371_v23 }
 0x509   :  { %2380 = vmatpush3.msra.mxu1 %v2371_v23  ;;  %2383 = vmatprep.mubr.msk.f32.mxu1 %vm82_vm0, %v1566_v48 }
 0x50a   :  { %2381 = vmatprep.subr.mxu1 %v1546_v42 }
 0x50b   :  { %2382 = vmatpush3.msra.mxu1 %v1546_v42 }
 0x50c   :  { %2384 = vmatmul.mubr.msk.f32.vlgmr.msra.gmra.mxu1 %vm82_vm0, %v1567_v49 }
 0x50d   :  { %2386 = vmatprep.mubr.msk.f32.mxu1 %vm82_vm0, %v1568_v50 }
 0x510   :  { %2387 = vmatmul.mubr.msk.f32.gmra.mxu1 %vm82_vm0, %v1569_v51 }
 0x511   :  { %2411 = vmatprep.mubr.msk.f32.mxu1 %vm82_vm0, %v1769_v52 }
 0x5c3   :  { %v2399_v58 = vpop.f32.mrf.mxu0 }
 0x5c4   :  { %v2357_v9 = vpop.f32.mrf.mxu1 }
 0x5c5   :  { %v1749_v59 = vpop.f32.mrf.mxu0  ;;  %v1477_v19 = vadd.f32 %v2357_v9, %v1264_v17 }
 0x5c6   :  { %v1457_v10 = vpop.f32.mrf.mxu1 }
 0x5c7   :  { %v2402_v60 = vpop.f32.mrf.mxu0  ;;  %v1476_v26 = vadd.f32 %v1457_v10, %v1259_v18 }
 0x5c8   :  { %2403 = vmatprep.subr.mxu1 %v2402_v60  ;;  %v2360_v11 = vpop.f32.mrf.mxu1 }
 0x5c9   :  { %v1759_v61 = vpop.f32.mrf.mxu0  ;;  %2404 = vmatpush3.msra.mxu1 %v2402_v60  ;;  %v1479_v32 = vadd.f32 %v2360_v11, %v1274_v25 }
 0x5ca   :  { %2405 = vmatprep.subr.mxu1 %v1759_v61  ;;  %v1467_v12 = vpop.f32.mrf.mxu1 }
 0x5cb   :  { %2406 = vmatpush3.msra.mxu1 %v1759_v61  ;;  %v1478_v36 = vadd.f32 %v1467_v12, %v1269_v31 }
 0x5cc   :  { %2407 = vmatprep.subr.mxu1 %v2399_v58  ;;  %v2385_v13 = vpop.f32.mrf.mxu1 }
 0x5cd   :  { %2408 = vmatpush3.msra.mxu1 %v2399_v58  ;;  %v1668_v27 = vadd.f32 %v2385_v13, %v1477_v19 }
 0x5ce   :  { %2409 = vmatprep.subr.mxu1 %v1749_v59  ;;  %v1648_v14 = vpop.f32.mrf.mxu1 }
 0x5cf   :  { %2410 = vmatpush3.msra.mxu1 %v1749_v59  ;;  %v1667_v33 = vadd.f32 %v1648_v14, %v1476_v26 }
 0x5d0   :  { %2412 = vmatmul.mubr.msk.f32.vlgmr.msra.gmra.mxu1 %vm82_vm0, %v1770_v62  ;;  %v2388_v15 = vpop.f32.mrf.mxu1 }
 0x5d1   :  { %2414 = vmatprep.mubr.msk.f32.mxu1 %vm82_vm0, %v1771_v63  ;;  %v1670_v37 = vadd.f32 %v2388_v15, %v1479_v32 }
 0x5d2   :  { %v1658_v24 = vpop.f32.mrf.mxu1 }
 0x5d3   :  { %v1669_v1 = vadd.f32 %v1658_v24, %v1478_v36 }
 0x5d4   :  { %2415 = vmatmul.mubr.msk.f32.gmra.mxu1 %vm82_vm0, %v1772_v2 }
 0x690   :  { %v2413_v29 = vpop.f32.mrf.mxu1 }
 0x691   :  { %v1871_v34 = vadd.f32 %v2413_v29, %v1668_v27 }
 0x692   :  { %v1851_v35 = vpop.f32.mrf.mxu1 }
 0x693   :  { %v1899_v38 = vmul.f32 %v1886_v30, %v1871_v34  ;;  %v1870_v39 = vadd.f32 %v1851_v35, %v1667_v33 }
 0x694   :  { %v2416_v0 = vpop.f32.mrf.mxu1 }
 0x695   :  { %v1898_v3 = vmul.f32 %v1881_v16, %v1870_v39  ;;  %v1873_v21 = vadd.f32 %v2416_v0, %v1670_v37  ;;  %v1903_v41 = vsel %vm82_vm0, %v1899_v38, 0.0 }
 0x696   :  { %v1861_v40 = vpop.f32.mrf.mxu1 }
 0x697   :  { %v1902_v22 = vsel %vm82_vm0, %v1898_v3, 0.0  ;;  %v1872_v23 = vadd.f32 %v1861_v40, %v1669_v1  ;;  %v1901_v42 = vmul.f32 %v1896_v4, %v1873_v21 }
 0x698   :  { %v1904_v20 = vadd.f32 %v1903_v41, %v1902_v22 }
 0x699   :  { %v1900_v43 = vmul.f32 %v1891_v28, %v1872_v23  ;;  %v1907_v46 = vsel %vm82_vm0, %v1901_v42, 0.0 }
 0x69b   :  { %v1905_v44 = vsel %vm82_vm0, %v1900_v43, 0.0 }
 0x69c   :  { %v1906_v45 = vadd.f32 %v1905_v44, %v1904_v20 }
 0x69e   :  { %v1908_v47 = vadd.f32 %v1907_v46, %v1906_v45 }
 0x6a0   :  { %v1909_v48 = vrot.slane %v1908_v47, 4 }
 0x6a2   :  { %v1910_v49 = vadd.f32 %v1909_v48, %v1908_v47 }
 0x6a4   :  { %v1911_v50 = vrot.slane %v1910_v49, 2 }
 0x6a6   :  { %v1912_v51 = vadd.f32 %v1911_v50, %v1910_v49 }
 0x6a8   :  { %v1913_v52 = vrot.slane %v1912_v51, 1 }
 0x6aa   :  { %v1914_v54 = vadd.f32 %v1913_v52, %v1912_v51 }
 0x6ac   :  { %v1917_v55 = vadd.f32 %v1916_v53, %v1914_v54 }
 0x6ae   :  { %vm1918_vm1 = vcmp.ne.f32.partialorder %v1917_v55, %v1917_v55 }
 0x6af   :  { %v1923_v56 = vsel %vm1918_vm1, 0.0, %v1917_v55  ;;  %v1919_v58 = vsel %vm1918_vm1, 0.0, %v2521_v57 }
 0x6b0   :  { %v1924_v59 = vsel %vm82_vm0, %v1923_v56, 0.0  ;;  %v1920_v60 = vsel %vm82_vm0, %v1919_v58, 0.0 }
 0x6b1   :  { %1925 = vadd.xlane.f32.xlu1 %v1924_v59  ;;  %1921 = vadd.xlane.f32.xlu0 %v1920_v60 }
 0x73a   :  { %v1922_v61 = vpop.xlane.xlu0 %1921  ;;  %v1926_v63 = vpop.xlane.xlu1 %1925 }
 0x73b   :  { %2427 = vrcp.f32 %v1922_v61  ;;  %vm1927_vm3 = vcmp.gt.f32.partialorder %v1922_v61, 0.0 }
 0x748   :  { %v2428_v62 = vpop.eup %2427 }
 0x749   :  { %v1929_v2 = vmul.f32 %v2428_v62, %v1926_v63 }
 0x74b   :  { %v1930_v5 = vsel %vm1927_vm3, %v1929_v2, 0.0 }
 0x74c   :  { %1932 = vst.msk [vmem:[#allocation9] sm:$0x1] %vm1931_vm2, %v1930_v5 }
 0x74d   :  { %2500 = shalt.err (!%p2497_p5)
}
 0x74e   :  { %1942 = dma.vmem_to_hbm [thread:$0]  %s1940_s28, 16, %s2827_s6, [#allocation5]  }
 0x74f   :  { %2513 = dma.done.wait [#allocation5], 16  }
 0x750   :  { %2514 = vsyncadd [#allocation5], 4294967280 }
 0x751   :  { %1946 = vsyncpa [#allocation4], 1 }
 0x752   :  { %1947 = vsyncpa [#allocation7], 1 }
 0x753   :  { %1948 = vsyncpa [#allocation5], 1 }

</bundles_post_ra>
